<compile_context>
chip_gen: v7x
topology: tpu7x:2x2x1
jax: 0.10.0
libtpu: 0.0.40
codegen_flags: <defaults>
</compile_context>

<pallas_src>
import functools

import jax
import jax.numpy as jnp
from jax.experimental import pallas as pl
from jax.experimental.pallas import tpu as pltpu

_LANE = 128                      # vreg lane width
_SUBLANE = 8                     # f32 sublane count
_TARGET_STEP_BYTES = 2 << 20     # >= ~2 MiB of activation rows per grid step
_MIN_TILE = 256                  # don't shrink row tiles below this for VMEM
_FALLBACK_VMEM = 64 << 20        # conservative (v7x per-TC) if get_tpu_info fails


def _cdiv(a, b):
    return -(-a // b)


def _round_up(x, m):
    return _cdiv(x, m) * m


# ----------------------------------------------------------------------------
# Kernel
# ----------------------------------------------------------------------------
def _linear_kernel(x_ref, w_ref, b_ref, o_ref):
    # x_ref: [tile, D]          activations (f32 or bf16), streamed per grid step
    # w_ref: [D, nc_pad]        resident weight (class dim padded to 128 for MXU)
    # b_ref: [1, nc_pad]        resident f32 bias
    # o_ref: [tile, n_classes]  f32 logits, UNPADDED class dim (masked vst; the
    #                           HBM-byte saving beats the lane-dense-store win
    #                           when n_classes is tiny)
    nc = o_ref.shape[-1]
    acc = jnp.dot(x_ref[...], w_ref[...], preferred_element_type=jnp.float32)
    o_ref[...] = (acc[:, :nc] + b_ref[...][:, :nc]).astype(o_ref.dtype)


# ----------------------------------------------------------------------------
# Build-capability / hardware probes (run once, outside jit)
# ----------------------------------------------------------------------------
_BUFFERED_OK = None


def _probe_copy_kernel(x_ref, o_ref):
    o_ref[...] = x_ref[...]


def _resident_single_buffer_supported():
    """Probe (once) whether pipeline_mode=pl.Buffered(1) compiles on this JAX
    build, so constant-index weight/bias blocks are single- (not double-)
    buffered in VMEM."""
    global _BUFFERED_OK
    if _BUFFERED_OK is None:
        try:
            probe = pl.pallas_call(
                _probe_copy_kernel,
                out_shape=jax.ShapeDtypeStruct((_SUBLANE, _LANE), jnp.float32),
                grid_spec=pltpu.PrefetchScalarGridSpec(
                    num_scalar_prefetch=0,
                    grid=(2,),
                    in_specs=[pl.BlockSpec((_SUBLANE, _LANE), lambda i: (0, 0),
                                           pipeline_mode=pl.Buffered(1))],
                    out_specs=pl.BlockSpec((_SUBLANE, _LANE), lambda i: (0, 0)),
                ),
            )
            jax.jit(probe).lower(
                jax.ShapeDtypeStruct((_SUBLANE, _LANE), jnp.float32)).compile()
            _BUFFERED_OK = True
        except Exception:
            _BUFFERED_OK = False
    return _BUFFERED_OK


def _vmem_capacity_bytes():
    try:
        return int(pltpu.get_tpu_info().vmem_capacity_bytes)
    except Exception:
        return _FALLBACK_VMEM


# ----------------------------------------------------------------------------
# Tiling
# ----------------------------------------------------------------------------
def _choose_tile(n_nodes, row_in_bytes, row_out_bytes, resident_bytes,
                 vmem_budget, tile_nodes):
    if tile_nodes is None:
        # Big enough that the ~0.35us per-grid-step overhead is amortized even
        # for small dim_embed (e.g. D=32 f32 -> ~16K rows per step).
        tile = max(512, _cdiv(_TARGET_STEP_BYTES, row_in_bytes))
    else:
        tile = int(tile_nodes)
    tile = _round_up(tile, _SUBLANE)

    # VMEM cap: double-buffered x tile + double-buffered output tile must fit
    # in the budget left over by the resident weight/bias.
    per_row = 2 * row_in_bytes + 2 * row_out_bytes
    max_tile = max(_SUBLANE,
                   ((vmem_budget - resident_bytes) // per_row) // _SUBLANE * _SUBLANE)
    if max_tile < _MIN_TILE:
        # TODO(synk): for huge dim_embed where even a _MIN_TILE-row x tile blows
        # the VMEM budget (v7x 64 MiB), add an inner K ("arbitrary") grid axis
        # with an f32 VMEM accumulator instead of shrinking row tiles further.
        pass
    tile = min(tile, max_tile)

    # Don't tile past the problem size.
    tile = min(tile, _round_up(n_nodes, _SUBLANE))

    # v7x megacore: the parallel node axis is sharded across 2 TensorCores, so
    # make sure the grid has at least 2 steps for mid-size inputs.
    if n_nodes > _SUBLANE and _cdiv(n_nodes, tile) < 2:
        tile = _round_up(_cdiv(n_nodes, 2), _SUBLANE)

    return max(tile, _SUBLANE)


# ----------------------------------------------------------------------------
# Forward
# ----------------------------------------------------------------------------
@functools.partial(jax.jit, static_argnames=("n_classes", "tile_nodes", "use_buffered"))
def _forward(x, weight_t_pad, bias_pad, *, n_classes, tile_nodes, use_buffered):
    n_nodes, dim_embed = x.shape
    d_w, nc_pad = weight_t_pad.shape
    assert d_w == dim_embed, "weight_t_pad must be [dim_embed, nc_pad]"
    assert nc_pad % _LANE == 0 and n_classes <= nc_pad
    assert bias_pad.shape == (1, nc_pad)

    # Match activations to the (possibly bf16) weight dtype so HBM reads are
    # halved on the bf16 path; a no-op when the caller already feeds that dtype.
    if x.dtype != weight_t_pad.dtype:
        x = x.astype(weight_t_pad.dtype)

    x_bytes = jnp.dtype(x.dtype).itemsize
    w_bytes = jnp.dtype(weight_t_pad.dtype).itemsize
    out_dtype = jnp.float32                       # logit bytes are tiny: keep f32
    o_bytes = jnp.dtype(out_dtype).itemsize

    # Per-generation VMEM budget (~48 MiB on v7x, ~96 MiB on v5e/v6e).
    vmem_cap = _vmem_capacity_bytes()
    vmem_budget = (vmem_cap * 3) // 4
    resident_copies = 1 if use_buffered else 2
    resident_bytes = resident_copies * (dim_embed * nc_pad * w_bytes + nc_pad * 4)

    tile = _choose_tile(n_nodes, dim_embed * x_bytes, n_classes * o_bytes,
                        resident_bytes, vmem_budget, tile_nodes)
    grid = (_cdiv(n_nodes, tile),)                # partial tail block, no padding

    vmem_need = resident_bytes + tile * (2 * dim_embed * x_bytes
                                         + 2 * n_classes * o_bytes)
    vmem_limit = int(min(max(int(vmem_need * 1.25), 32 << 20), vmem_budget))

    cost = pl.CostEstimate(
        flops=2 * n_nodes * dim_embed * nc_pad,
        transcendentals=0,
        bytes_accessed=(n_nodes * dim_embed * x_bytes
                        + dim_embed * nc_pad * w_bytes + nc_pad * 4
                        + n_nodes * n_classes * o_bytes),
    )

    resident_kwargs = {"pipeline_mode": pl.Buffered(1)} if use_buffered else {}
    w_spec = pl.BlockSpec((dim_embed, nc_pad), lambda i: (0, 0), **resident_kwargs)
    b_spec = pl.BlockSpec((1, nc_pad), lambda i: (0, 0), **resident_kwargs)

    y = pl.pallas_call(
        _linear_kernel,
        out_shape=jax.ShapeDtypeStruct((n_nodes, n_classes), out_dtype),
        grid_spec=pltpu.PrefetchScalarGridSpec(
            num_scalar_prefetch=0,
            grid=grid,
            in_specs=[
                pl.BlockSpec((tile, dim_embed), lambda i: (i, 0)),
                w_spec,
                b_spec,
            ],
            out_specs=pl.BlockSpec((tile, n_classes), lambda i: (i, 0)),
        ),
        compiler_params=pltpu.CompilerParams(
            dimension_semantics=("parallel",),
            vmem_limit_bytes=vmem_limit,
        ),
        cost_estimate=cost,
    )(x, weight_t_pad, bias_pad)
    return y


def node_classifier_forward(last_hidden_state, weight_t_pad, bias_pad, n_classes,
                            *, tile_nodes=None):
    """Pallas forward for NodeClassifier.

    last_hidden_state: [n_nodes, dim_embed]
    weight_t_pad:      [dim_embed, nc_pad]  (from prepare_node_classifier_params)
    bias_pad:          [1, nc_pad] float32
    n_classes:         true number of classes (<= nc_pad)

    Returns (logits, None) with logits: [n_nodes, n_classes] float32, matching
    `return (self.classifier(last_hidden_state), None)`.
    """
    y = _forward(last_hidden_state, weight_t_pad, bias_pad,
                 n_classes=int(n_classes), tile_nodes=tile_nodes,
                 use_buffered=_resident_single_buffer_supported())
    return (y, None)


# ----------------------------------------------------------------------------
# Parameters
# ----------------------------------------------------------------------------
def init_node_classifier_params(key, dim_embed, n_classes, dtype=jnp.float32):
    """nn.Linear-style init: W, b ~ U(-1/sqrt(dim_embed), 1/sqrt(dim_embed)).
    Returns (weight [n_classes, dim_embed], bias [n_classes]) in nn.Linear layout."""
    kw, kb = jax.random.split(key)
    bound = 1.0 / (dim_embed ** 0.5)
    weight = jax.random.uniform(kw, (n_classes, dim_embed), dtype, -bound, bound)
    bias = jax.random.uniform(kb, (n_classes,), dtype, -bound, bound)
    return weight, bias


def prepare_node_classifier_params(weight, bias, dtype=jnp.bfloat16):
    """One-time (init-time) param prep: transpose the nn.Linear weight, cast to
    the compute dtype (bf16 by default: halves HBM read bytes on v5e/v6e/v7x),
    and zero-pad the class dim up to a lane multiple of 128 for the MXU.
    Doing this per forward call would re-copy the weight through HBM each time.

    Returns (weight_t_pad [dim_embed, nc_pad], bias_pad [1, nc_pad] f32, n_classes).
    """
    n_classes, dim_embed = weight.shape
    nc_pad = _round_up(n_classes, _LANE)
    w = jnp.asarray(weight, dtype).T
    w = jnp.pad(w, ((0, 0), (0, nc_pad - n_classes)))
    b = jnp.asarray(bias, jnp.float32).reshape(1, n_classes)
    b = jnp.pad(b, ((0, 0), (0, nc_pad - n_classes)))
    return w, b, n_classes


# ----------------------------------------------------------------------------
# Demo / self-check
# ----------------------------------------------------------------------------
if __name__ == "__main__":
    key = jax.random.PRNGKey(0)
    k_x, k_p = jax.random.split(key)

    # Small shapes consistent with the module: ragged n_nodes, tiny n_classes
    # (exercises the partial tail block and the unpadded-output store).
    n_nodes, dim_embed, n_classes = 20, 32, 5

    weight, bias = init_node_classifier_params(k_p, dim_embed, n_classes)
    x = jax.random.normal(k_x, (n_nodes, dim_embed), jnp.float32)

    # --- f32 path: exact check against the plain-JAX reference ----------------
    w32, b32, nc = prepare_node_classifier_params(weight, bias, dtype=jnp.float32)
    y, extra = node_classifier_forward(x, w32, b32, nc)
    y = jax.block_until_ready(y)
    assert extra is None
    assert y.shape == (n_nodes, n_classes) and y.dtype == jnp.float32
    y_ref = x @ weight.T + bias
    assert jnp.allclose(y, y_ref, atol=1e-5, rtol=1e-5), \
        float(jnp.max(jnp.abs(y - y_ref)))

    # --- bf16 path: halved HBM read bytes, f32 MXU accumulation ---------------
    xb = x.astype(jnp.bfloat16)
    w16, b16, nc = prepare_node_classifier_params(weight, bias, dtype=jnp.bfloat16)
    yb, _ = node_classifier_forward(xb, w16, b16, nc)
    yb = jax.block_until_ready(yb)
    assert yb.shape == (n_nodes, n_classes) and yb.dtype == jnp.float32
    yb_ref = jnp.dot(xb, w16[:, :nc], preferred_element_type=jnp.float32) + b16[:, :nc]
    assert jnp.allclose(yb, yb_ref, atol=2e-3, rtol=2e-3), \
        float(jnp.max(jnp.abs(yb - yb_ref)))

    print("KERNEL_OK")
</pallas_src>

<mosaic_0001>
module attributes {stable_mosaic.version = 11 : i64} {
  func.func @_linear_kernel(%arg0: i32, %arg1: memref<16x32xf32, #tpu.memory_space<vmem>>, %arg2: memref<32x128xf32, #tpu.memory_space<vmem>>, %arg3: memref<1x128xf32, #tpu.memory_space<vmem>>, %arg4: memref<16x5xf32, #tpu.memory_space<vmem>>) attributes {dimension_semantics = [#tpu.dimension_semantics<parallel>], iteration_bounds = array<i64: 2>, scalar_prefetch = 0 : i64, scratch_operands = 0 : i64, tpu.core_type = #tpu.core_type<tc>, window_params = [{transform_indices = @transform_0, window_bounds = array<i64: 16, 32>}, {pipeline_mode = #tpu.pipeline_mode<synchronous>, transform_indices = @transform_1, window_bounds = array<i64: 32, 128>}, {pipeline_mode = #tpu.pipeline_mode<synchronous>, transform_indices = @transform_2, window_bounds = array<i64: 1, 128>}, {transform_indices = @transform_3, window_bounds = array<i64: 16, 5>}]} {
    %c0 = arith.constant 0 : index
    %c0_0 = arith.constant 0 : index
    %0 = vector.load %arg1[%c0, %c0_0] : memref<16x32xf32, #tpu.memory_space<vmem>>, vector<16x32xf32>
    %c0_1 = arith.constant 0 : index
    %c0_2 = arith.constant 0 : index
    %1 = vector.load %arg2[%c0_1, %c0_2] : memref<32x128xf32, #tpu.memory_space<vmem>>, vector<32x128xf32>
    %cst = arith.constant dense<0.000000e+00> : vector<16x128xf32>
    %2 = tpu.matmul %0, %1, %cst {dimension_numbers = #tpu.dot_dimension_numbers<[1], [0], [0], [1], [0, 0, 1, 1], [], []>} : vector<16x32xf32>, vector<32x128xf32>, vector<16x128xf32> -> vector<16x128xf32>
    %3 = vector.extract_strided_slice %2 {offsets = [0, 0], sizes = [16, 5], strides = [1, 1]} : vector<16x128xf32> to vector<16x5xf32>
    %c0_3 = arith.constant 0 : index
    %c0_4 = arith.constant 0 : index
    %4 = vector.load %arg3[%c0_3, %c0_4] : memref<1x128xf32, #tpu.memory_space<vmem>>, vector<1x128xf32>
    %5 = vector.extract_strided_slice %4 {offsets = [0, 0], sizes = [1, 5], strides = [1, 1]} : vector<1x128xf32> to vector<1x5xf32>
    %6 = vector.broadcast %5 : vector<1x5xf32> to vector<16x5xf32>
    %7 = arith.addf %3, %6 : vector<16x5xf32>
    %c0_5 = arith.constant 0 : index
    %c0_6 = arith.constant 0 : index
    %8 = vector.load %arg4[%c0_5, %c0_6] : memref<16x5xf32, #tpu.memory_space<vmem>>, vector<16x5xf32>
    tpu.vector_store %arg4[%c0_5, %c0_6], %7 {strides = array<i32>} : memref<16x5xf32, #tpu.memory_space<vmem>>, vector<16x5xf32>,
    return
  }
  func.func @transform_0(%arg0: i32) -> (i32, i32) {
    %c0_i32 = arith.constant 0 : i32
    %c0_i32_0 = arith.constant 0 : i32
    return %arg0, %c0_i32 : i32, i32
  }
  func.func @transform_1(%arg0: i32) -> (i32, i32) {
    %c0_i32 = arith.constant 0 : i32
    %c0_i32_0 = arith.constant 0 : i32
    %c0_i32_1 = arith.constant 0 : i32
    return %c0_i32, %c0_i32_0 : i32, i32
  }
  func.func @transform_2(%arg0: i32) -> (i32, i32) {
    %c0_i32 = arith.constant 0 : i32
    %c0_i32_0 = arith.constant 0 : i32
    %c0_i32_1 = arith.constant 0 : i32
    return %c0_i32, %c0_i32_0 : i32, i32
  }
  func.func @transform_3(%arg0: i32) -> (i32, i32) {
    %c0_i32 = arith.constant 0 : i32
    %c0_i32_0 = arith.constant 0 : i32
    return %arg0, %c0_i32 : i32, i32
  }
}

</mosaic_0001>

<bundles_post_ra>
// kernel: _forward.1
= control target key start
LH: loop header
LB: loop body
LE: loop exit
PB: predicated region body
PF: predicated region fallthrough
CT: control target
= control target key end

     0   :  { %8 = vsyncpa [#allocation3], 0  ;;  %s1105_s0 = inlined_call_operand.hbm [shape: f32[20,32], index: 0, kind: input, shape index: {}]   ;;  %s1106_s1 = inlined_call_operand.hbm [shape: f32[32,128], index: 1, kind: input, shape index: {}]   ;;  %s1107_s2 = inlined_call_operand.vmem [shape: f32[1,128], index: 2, kind: input, shape index: {}]   ;;  %s1108_s3 = inlined_call_operand.vmem [shape: f32[20,5], index: 3, kind: output, shape index: {}]  }
   0x1   :  { %10 = vsyncpa [#allocation3 + $0x1], 0 }
   0x2   :  { %11 = vsyncpa [#allocation5], 0  ;;  %s918_s12 = smov 0   ;;  %s920_s13 = smov 0  }
   0x3   :  { %s922_s14 = smov 0   ;;  %s924_s15 = smov 0  }
   0x4 LB: > { %s937_s16 = sadd.s32 4294967295, %s858_s15   ;;  %s940_s17 = sadd.s32 1, %s858_s15   ;;  %s858_s15 = sphi %s924_s15, %s1126_s15   ;;  %s854_s14 = sphi %s922_s14, %s1125_s14   ;;  %s850_s13 = sphi %s920_s13, %s1124_s13   ;;  %s846_s12 = sphi %s918_s12, %s1123_s12  }
   0x5   : > { %s21_s18 = ssub.s32 %s858_s15, %s940_s17  ;;  %s24_s19 = sadd.s32 1, %s854_s14 }
   0x6   : > { %p22_p0 = scmp.eq.s32.totalorder %s21_s18, 0  ;;  %p31_p1 = scmp.ne.s32.totalorder %s854_s14, %s850_s13 }
   0x7   : > { %p32_p2 = scmp.eq.s32.totalorder %s858_s15, 0  ;;  %p37_p3 = scmp.ne.s32.totalorder %s850_s13, %s846_s12 }
   0x8   : > { %s950_s20 = scalar_select %p22_p0, %s854_s14, %s24_s19  }
   0x9   : > { %p952_p4 = por %p32_p2, %p31_p1  ;;  %p1109_p5 = scmp.eq.s32.totalorder %s937_s16, 0 }
   0xa   : > { %p103_p6 = scmp.eq.s32.totalorder %s937_s16, 1  ;;  %p557_p7 = scmp.ge.s32.totalorder %s858_s15, 1 }
   0xb   : > { %s1112_s21 = scalar_select %p952_p4, 1, 0 }
   0xc   : > { %p961_p8 = por %p1109_p5, %p37_p3  ;;  %p116_p9 = scmp.lt.s32.totalorder %s858_s15, 3 }
   0xd   : > { %p966_p10 = por %p103_p6, %p31_p1  ;;  %s892_s25 = smov [#allocation4]  }
   0xe   : > { %s1113_s22 = scalar_select %p961_p8, 1, 0 }
   0xf   : > { %s1114_s23 = scalar_select %p966_p10, 1, 0 }
  0x10   : > { %p970_p11 = pnand %p557_p7, %p116_p9  ;;  %s128_s26 = sshll.u32 %s892_s25, 4  ;;  %s129_s26 = int_to_ptr.vmem [resolvable:$true] %s128_s26 }
  0x11   : > { %s732_s30 = scalar_lea.hbm %s1106_s1, 512 }
  0x12   : > { %s1115_s24 = scalar_select %p970_p11, 1, 0 }
  0x13   : > { %p625_p12 = pneg %p970_p11  ;;  %p733_p0 = scmp.ne.s32.totalorder %s1106_s1, %s732_s30 }
  0x14   : > { %p739_p6 = scmp.lt.u32.totalorder %s732_s30, %s1106_s1 }
  0x15   : > { %p978_p13 = pnand %p625_p12, %p1109_p5 }
  0x17   : > { %p734_p1 = pneg %p978_p13 }
  0x19   : > { %p735_p2 = pnand %p734_p1, %p733_p0 }
  0x1b   : > { %p736_p3 = pneg %p735_p2 }
  0x1d   : > { %p741_p7 = pnand %p739_p6, %p736_p3 }
  0x1f   : > { %744 = shalt.err (!%p741_p7)
}
  0x20   : > { %s745_s8 = scalar_lea.vmem %s129_s26, 512  ;;  %p753_p10 = scmp.lt.s32.totalorder %s129_s26, %s129_s26 }
  0x21   : > { %p746_p9 = scmp.ne.s32.totalorder %s129_s26, %s745_s8  ;;  %p754_p8 = scmp.lt.s32.totalorder %s745_s8, %s745_s8 }
  0x23   : > { %p748_p12 = pnand %p746_p9, %p734_p1  ;;  %p755_p11 = por %p754_p8, %p753_p10 }
  0x25   : > { %p749_p5 = pneg %p748_p12 }
  0x27   : > { %p756_p4 = pnand %p755_p11, %p749_p5 }
  0x29   : > { %759 = shalt.err (!%p756_p4)
}
  0x2a   : > { %s893_s9 = smov 128   ;;  %s894_s10 = smov 8  }
  0x2b   : > { %628 = dma.hbm_to_vmem [thread:$0]  (!%p978_p13), %s1106_s1, 512, %s129_s26, [#allocation5], %s893_s9, %s893_s9, %s894_s10  }
  0x2c   : > { %p559_p0 = scmp.ge.s32.totalorder %s858_s15, 2 }
  0x2d   : > { %p1117_p2 = scmp.ne.s32.totalorder (!%p559_p0), %s1112_s21, 0 }
  0x2e   : > { %141 = sbr.rel (%p559_p0) target bundleno = 88 (0x58), region = 24 }
  0x35   : > { %144 = sbr.rel (!%p1117_p2) target bundleno = 88 (0x58), region = 28  ;;  %s145_s18 = sand.u32 (%p1117_p2), 1, %s854_s14  }
  0x36   : > { %s561_s19 = sshll.u32 (%p1117_p2), %s858_s15, 1  ;;  %s560_s25 = sshll.u32 (%p1117_p2), %s145_s18, 4 }
  0x37   : > { %s151_s28 = ssub.s32 (%p1117_p2), 3, %s561_s19  ;;  %s1006_s30 = scalar_lea.sflag (%p1117_p2), [#allocation3], %s145_s18 }
  0x38   : > { %p152_p4 = scmp.lt.s32.totalorder (%p1117_p2), %s151_s28, 2  ;;  %s149_s26 = scalar_lea.vmem (%p1117_p2), [#allocation2], %s560_s25 }
  0x3c   : > { %s1128_s28 = smov (!%p152_p4, %s151_s28), 2 }
  0x3d   : > { %s1003_s29 = sshll.u32 %s1128_s28, 7 }
  0x3e   : > { %s156_s27 = ssub.s32 256, %s1003_s29 }
  0x3f   : > { %157 = vsyncadd %s1006_s30, %s156_s27  ;;  %p563_p5 = scmp.ne.s32.totalorder %s1003_s29, 0  ;;  %s591_s21 = sshll.u32 %s858_s15, 8 }
  0x40   : > { %s1014_s6 = scalar_lea.hbm %s1105_s0, %s591_s21  ;;  %s162_s7 = sshll.u32 %s149_s26, 4  ;;  %s1016_s7 = int_to_ptr.vmem [resolvable:$true] %s162_s7 }
  0x41   : > { %s760_s8 = scalar_lea.hbm %s1014_s6, %s1003_s29  ;;  %s764_s15 = scalar_lea.hbm %s1105_s0, 384 }
  0x42   : > { %p761_p8 = scmp.ne.s32.totalorder %s1014_s6, %s760_s8  ;;  %p765_p13 = scmp.lt.u32.totalorder %s1014_s6, %s1105_s0 }
  0x43   : > { %p766_p1 = scmp.lt.u32.totalorder %s764_s15, %s760_s8  ;;  %p768_p6 = scmp.lt.u32.totalorder %s760_s8, %s1014_s6 }
  0x44   : > { %p762_p10 = pnand %p761_p8, %p563_p5 }
  0x45   : > { %p767_p3 = por %p766_p1, %p765_p13 }
  0x46   : > { %p763_p11 = pneg %p762_p10 }
  0x47   : > { %p769_p7 = por %p768_p6, %p767_p3 }
  0x49   : > { %p770_p9 = pnand %p769_p7, %p763_p11 }
  0x4b   : > { %773 = shalt.err (!%p770_p9)
}
  0x4c   : > { %s774_s18 = scalar_lea.vmem %s1016_s7, %s1003_s29  ;;  %s895_s19 = smov [#allocation2]  }
  0x4d   : > { %p775_p12 = scmp.ne.s32.totalorder %s1016_s7, %s774_s18  ;;  %s778_s25 = sshll.u32 %s895_s19, 4  ;;  %s779_s25 = int_to_ptr.vmem [resolvable:$false] %s778_s25 }
  0x4e   : > { %s780_s28 = scalar_lea.vmem %s779_s25, 512  ;;  %p781_p4 = scmp.lt.s32.totalorder %s1016_s7, %s779_s25 }
  0x4f   : > { %p776_p0 = pnand %p775_p12, %p563_p5  ;;  %p782_p8 = scmp.lt.s32.totalorder %s780_s28, %s774_s18 }
  0x51   : > { %p777_p2 = pneg %p776_p0  ;;  %p783_p10 = por %p782_p8, %p781_p4 }
  0x53   : > { %p784_p13 = pnand %p783_p10, %p777_p2 }
  0x55   : > { %787 = shalt.err (!%p784_p13)
}
  0x56   : > { %s896_s27 = smov 128   ;;  %s897_s26 = smov 8  }
  0x57   : > { %168 = dma.hbm_to_vmem [thread:$0]  (%p563_p5), %s1014_s6, %s1003_s29, %s1016_s7, %s1006_s30, %s896_s27, %s896_s27, %s897_s26  }
  0x58 PF: > { %p1118_p11 = scmp.ne.s32.totalorder %s1115_s24, 0 }
  0x59   : > { %s176_s21 = sand.u32 (!%p1118_p11), 1, %s850_s13   ;;  %p1119_p1 = scmp.ne.s32.totalorder (!%p1118_p11), %s1113_s22, 0 }
  0x5a   : > { %174 = sbr.rel (%p1118_p11) target bundleno = 377 (0x179), region = 32  ;;  %s568_s4 = sshll.u32 (!%p1118_p11), %s176_s21, 4 }
  0x5b   : > { %s177_s5 = scalar_lea.sflag (!%p1118_p11), [#allocation3], %s176_s21  ;;  %s180_s8 = scalar_lea.vmem (!%p1118_p11), [#allocation2], %s568_s4 }
  0x61   : > { %837 = dma.done.wait (%p1119_p1), %s177_s5, 256  }
  0x62   : > { %839 = vsyncadd (%p1119_p1), %s177_s5, 4294967040  ;;  %p1120_p3 = scmp.eq.s32.totalorder %s937_s16, 0 }
  0x64   : > { %841 = dma.done.wait (%p1120_p3), [#allocation5], 512   ;;  %p1121_p5 = pmov %p1120_p3 }
  0x65   : > { %vm222_vm0 = vcmask 261120   ;;  %v218_v0 = vld [vmem:[#allocation4] sm:$0xff]  ;;  %v219_v1 = vld [vmem:[#allocation4 + $0x8] sm:$0xff]  ;;  %v220_v2 = vld [vmem:[#allocation4 + $0x10] sm:$0xff]  ;;  %vm313_vm1 = vcmask 39936   ;;  %s1057_s29 = scalar_lea.vmem [#allocation6], %s568_s4  }
  0x66   : > { %843 = vsyncadd (%p1121_p5), [#allocation5], 4294966784  ;;  %v612_v3 = vpack.c.bf16 %v219_v1, %v218_v0  ;;  %v221_v4 = vld [vmem:[#allocation4 + $0x18] sm:$0xff]  ;;  %v216_v5 = vld [vmem:[%s180_s8] sm:$0xff]  ;;  %p1122_p6 = scmp.ne.s32.totalorder %s1114_s23, 0 }
  0x67   : > { %v616_v6 = vpack.c.bf16 %v221_v4, %v220_v2  ;;  %609 = vmatprep.mubr.msk.f32.mxu0 %vm222_vm0, %v216_v5  ;;  %v217_v7 = vld [vmem:[%s180_s8 + $0x8] sm:$0xff]  ;;  %s575_s30 = sshll.u32 (%p1122_p6), %s937_s16, 1  ;;  %s592_s6 = sshll.u32 (%p1122_p6), %s937_s16, 4 }
  0x68   : > { %613 = vmatprep.subr.bf16.mxu0 %v612_v3  ;;  %v573_v8 = vld [vmem:[%s1107_s2] ss:$0 sm:$0xff]  ;;  %s324_s7 = ssub.s32 (%p1122_p6), 3, %s575_s30  ;;  %s1068_s15 = scalar_lea.vmem (%p1122_p6), %s1108_s3, %s592_s6  }
  0x69   : > { %615 = vmatpush3.bf16.msra.mxu0 %v612_v3  ;;  %p325_p7 = scmp.lt.s32.totalorder (%p1122_p6), %s324_s7, 2 }
  0x6a   : > { %617 = vmatprep.subr.bf16.mxu0 %v616_v6 }
  0x6d   : > { %619 = vmatpush3.bf16.msra.mxu0 %v616_v6 }
  0x70   : > { %610 = vmatmul.mubr.msk.f32.vlgmr.msra.gmra.mrb[0].mxu0 %vm222_vm0, %v217_v7 }
 0x141   : > { %322 = sbr.rel (!%p1122_p6) target bundleno = 377 (0x179), region = 44 }
 0x143   : > { %v611_v9 = vpop.f32.mrb[0].mxu0 }
 0x144   : > { %v312_v10 = vadd.f32 %v611_v9, %v573_v8  ;;  %v295_v11 = vpop.f32.mrb[1].mxu0 }
 0x145   : > { %v311_v12 = vadd.f32 %v573_v8, %v295_v11 }
 0x146   : > { %315 = vst.msk [vmem:[%s1057_s29 + $0x8] sm:$0xff] %vm313_vm1, %v312_v10 }
 0x147   : > { %314 = vst.msk [vmem:[%s1057_s29] sm:$0xff] %vm313_vm1, %v311_v12 }
 0x148   : > { %s1130_s7 = smov (!%p325_p7, %s324_s7), 2 }
 0x149   : > { %s576_s11 = sshll.u32 %s1130_s7, 7 }
 0x14a   : > { %p579_p9 = scmp.eq.s32.totalorder %s576_s11, 0 }
 0x14b   : > { %s1074_s23 = sshrl.u32 (!%p579_p9), %s1130_s7, 1 }
 0x14c   : > { %333 = sbr.rel (%p579_p9) target bundleno = 377 (0x179), region = 48  ;;  %p580_p12 = scmp.le.s32.totalorder (!%p579_p9), %s1074_s23, 0 }
 0x153   : > { %500 = sbr.rel (%p580_p12) target bundleno = 356 (0x164), region = 130  ;;  %s860_s16 = smov (!%p580_p12), %s1068_s15  }
 0x154   : > { %s864_s12 = smov (!%p580_p12), %s1057_s29   ;;  %s868_s18 = smov (!%p580_p12), 0  }
 0x155   : > { %s872_s19 = smov (!%p580_p12), 0  }
 0x15a LB: >> { %v397_v13 = vld [vmem:[%s866_s12] sm:$0xff]  ;;  %v399_v14 = vld [vmem:[%s866_s12 + $0x8] sm:$0xff]  ;;  %s401_s25 = sadd.s32 1, %s870_s18  ;;  %s391_s19 = sadd.s32 1, %s874_s19   ;;  %s874_s19 = sphi %s872_s19, %s391_s19   ;;  %s870_s18 = sphi %s868_s18, %s869_s18   ;;  %s866_s12 = sphi %s864_s12, %s406_s12   ;;  %s862_s16 = sphi %s860_s16, %s407_s16  }
 0x15b   : >> { %398 = vst [vmem:[%s862_s16] sm:$0xff] %v397_v13  ;;  %400 = vst [vmem:[%s862_s16 + $0x8] sm:$0xff] %v399_v14  ;;  %p402_p0 = scmp.ge.s32.totalorder %s401_s25, %s1074_s23  ;;  %p390_p2 = scmp.ge.s32.totalorder %s391_s19, %s1074_s23 }
 0x15d   : >> { %s1132_s25 = smov (%p402_p0, %s401_s25), 0  ;;  %393 = sbr.rel (!%p390_p2) target bundleno = 346 (0x15a), region = 136 }
 0x15e   : >> { %s581_s28 = sshll.u32 %s1132_s25, 4  ;;  %s869_s18 = smov %s1132_s25  }
 0x15f   : >> { %s406_s12 = scalar_lea.vmem %s1057_s29, %s581_s28 [#allocation6]   ;;  %s407_s16 = scalar_lea.vmem %s1068_s15, %s581_s28  }
 0x164 PF: > { %s1084_s27 = sand.u32 1, %s1130_s7   ;;  %s593_s26 = sshll.u32 %s1074_s23, 4 }
 0x165   : > { %s412_s21 = scalar_lea.vmem %s1057_s29, %s593_s26 [#allocation6]   ;;  %s414_s4 = scalar_lea.vmem %s1068_s15, %s593_s26  }
 0x166   : > { %p586_p4 = scmp.le.s32.totalorder %s1084_s27, 0 }
 0x167   : > { %s876_s5 = smov (!%p586_p4), %s414_s4   ;;  %s880_s8 = smov (!%p586_p4), %s412_s21  }
 0x168   : > { %514 = sbr.rel (%p586_p4) target bundleno = 377 (0x179), region = 141  ;;  %s884_s22 = smov (!%p586_p4), 0  }
 0x169   : > { %s888_s24 = smov (!%p586_p4), 0  }
 0x16f LB: >> { %v424_v15 = vld [vmem:[%s882_s8] sm:$0xff]  ;;  %s426_s30 = sadd.s32 1, %s886_s22  ;;  %s418_s24 = sadd.s32 1, %s890_s24   ;;  %s890_s24 = sphi %s888_s24, %s418_s24   ;;  %s886_s22 = sphi %s884_s22, %s885_s22   ;;  %s882_s8 = sphi %s880_s8, %s431_s8   ;;  %s878_s5 = sphi %s876_s5, %s432_s5  }
 0x170   : >> { %425 = vst [vmem:[%s878_s5] sm:$0xff] %v424_v15  ;;  %p427_p8 = scmp.ge.s32.totalorder %s426_s30, %s1084_s27  ;;  %p417_p10 = scmp.ge.s32.totalorder %s418_s24, %s1084_s27 }
 0x172   : >> { %s1134_s30 = smov (%p427_p8, %s426_s30), 0  ;;  %420 = sbr.rel (!%p417_p10) target bundleno = 367 (0x16f), region = 147 }
 0x173   : >> { %s587_s29 = sshll.u32 %s1134_s30, 3  ;;  %s885_s22 = smov %s1134_s30  }
 0x174   : >> { %s431_s8 = scalar_lea.vmem %s412_s21, %s587_s29 [#allocation6]   ;;  %s432_s5 = scalar_lea.vmem %s414_s4, %s587_s29  }
 0x179 PF: > { %p14_p13 = scmp.ge.s32.totalorder %s940_s17, 4   ;;  %s1123_s12 = smov %s850_s13 }
 0x17a   : > { %s1124_s13 = smov %s854_s14  ;;  %s1125_s14 = smov %s950_s20 }
 0x17b   : > { %s1126_s15 = smov %s940_s17  ;;  %16 = sbr.rel (!%p14_p13) target bundleno = 4 (0x4), region = 158 }
 0x182   :  { %448 = vsyncpa [#allocation3], 1 }
 0x183   :  { %450 = vsyncpa [#allocation3 + $0x1], 1 }
 0x184   :  { %451 = vsyncpa [#allocation5], 1 }

</bundles_post_ra>
